<compile_context>
chip_gen: v7x
topology: tpu7x:2x2x1
jax: 0.10.0
libtpu: 0.0.40
codegen_flags: <defaults>
</compile_context>

<pallas_src>
import functools

import jax
import jax.numpy as jnp
from jax.experimental import pallas as pl
from jax.experimental.pallas import tpu as pltpu

# --- hyperparameters (the module-level globals from the PyTorch source) ---
n_embd = 32
n_head = 4
block_size = 8        # max sequence length (size of the tril buffer)
dropout = 0.0         # eval mode: dropout is identity
head_size = n_embd // n_head
EPS = 1e-5            # nn.LayerNorm default eps

MM_DTYPE = jnp.bfloat16   # MXU-operand dtype (set to jnp.float32 for strict accuracy)
NEG_BIG = -1e30           # additive mask value (finite -> NaN-proof)


def _layernorm(x, g, b):
    mu = jnp.mean(x, axis=-1, keepdims=True)
    xc = x - mu
    var = jnp.mean(xc * xc, axis=-1, keepdims=True)
    return xc * jax.lax.rsqrt(var + EPS) * g + b


def block_kernel(x_ref, wa_ref, w2_ref, slab_ref, o_ref, *, seq_len, batch_tile):
    """One grid step processes rows = batch_tile * seq_len token rows."""
    T = seq_len
    tb = batch_tile
    C = n_embd
    hs = head_size
    rows = tb * T
    f32 = jnp.float32

    x = x_ref[...]                           # (rows, C) f32 packed tokens
    slab = slab_ref[...]                     # (16, 128) f32: mask + vectors
    V = block_size                           # row offset where vectors start
    bias = slab[0:T, 0:T]                    # additive causal mask (T, T)
    ln1g = slab[V + 0:V + 1, 0:C]
    ln1b = slab[V + 1:V + 2, 0:C]
    ln2g = slab[V + 2:V + 3, 0:C]
    ln2b = slab[V + 3:V + 4, 0:C]
    bp = slab[V + 4:V + 5, 0:C]
    b1 = slab[V + 5:V + 6, 0:4 * C]
    b2 = slab[V + 6:V + 7, 0:C]

    wa = wa_ref[...]                         # (C, 8C) bf16: [Wqkv | Wp | W1]
    wqkv = wa[:, 0:3 * C]                    # (C, 3C), Q cols pre-scaled
    wp = wa[:, 3 * C:4 * C]                  # (C, C)
    w1 = wa[:, 4 * C:8 * C]                  # (C, 4C)
    w2 = w2_ref[...]                         # (4C, C) bf16
    mmdt = wa.dtype

    # ------------- self-attention sublayer: x + proj(MHA(ln1(x))) ----------
    xn = _layernorm(x, ln1g, ln1b)
    qkv = jnp.dot(xn.astype(mmdt), wqkv,
                  preferred_element_type=f32)            # (rows, 3C)
    qkv3 = qkv.reshape(tb, T, 3 * C)                     # per-sequence view

    sa = jnp.zeros((rows, C), f32)
    for h in range(n_head):                              # static 4-iter loop
        q = qkv3[:, :, h * hs:(h + 1) * hs].astype(mmdt)             # (tb,T,hs)
        k = qkv3[:, :, C + h * hs:C + (h + 1) * hs].astype(mmdt)
        v = qkv3[:, :, 2 * C + h * hs:2 * C + (h + 1) * hs].astype(mmdt)

        # per-sequence scores: only the tb*T*T entries that are actually valid
        s = jnp.einsum('btd,bsd->bts', q, k,
                       preferred_element_type=f32)       # (tb, T, T)
        s = s + bias                                     # additive causal mask
        s = s - jnp.max(s, axis=-1, keepdims=True)
        p = jnp.exp(s)
        denom = jnp.sum(p, axis=-1, keepdims=True)
        p = p * pl.reciprocal(denom, approx=True)        # EUP slot
        att = jnp.einsum('bts,bsd->btd', p.astype(mmdt), v,
                         preferred_element_type=f32)     # (tb, T, hs)

        # concat(att_h over heads) @ Wp == sum_h att_h @ Wp[h*hs:(h+1)*hs, :]
        sa = sa + jnp.dot(att.reshape(rows, hs).astype(mmdt),
                          wp[h * hs:(h + 1) * hs, :],
                          preferred_element_type=f32)

    x1 = x + sa + bp

    # ------------- feed-forward sublayer: x + ffwd(ln2(x)) -----------------
    xn2 = _layernorm(x1, ln2g, ln2b)
    h1 = jnp.dot(xn2.astype(mmdt), w1, preferred_element_type=f32) + b1
    h1 = jnp.maximum(h1, 0.0)                            # ReLU
    ff = jnp.dot(h1.astype(mmdt), w2, preferred_element_type=f32) + b2

    o_ref[...] = (x1 + ff).astype(o_ref.dtype)


def _choose_batch_tile(B, T, rows_per_step=256, min_rows_for_split=256):
    """Batch sequences per grid step.

    Small problems (B*T < min_rows_for_split) run as a SINGLE grid step:
    v5e/v6e are one TensorCore (grid is a serial loop) and on v7x the
    cross-core fixed cost exceeds the tiny compute.  Large problems split
    into 'parallel' steps of <= rows_per_step rows each (feeds both v7x TCs
    and bounds the VMEM tile)."""
    if B * T <= max(rows_per_step, min_rows_for_split):
        return B
    best = 1
    for tb in range(1, B + 1):
        if B % tb == 0 and tb * T <= rows_per_step and (tb * T) % 8 == 0:
            best = tb
    # TODO(synk): if B is prime/indivisible this degrades to rows=T tiles;
    # pad B or allow a ragged last tile for that case.
    return best


def prepare_params(params):
    """Hoisted, once-per-model weight packing (not per forward call)."""
    C = n_embd
    scale = 1.0 / (C ** 0.5)   # PyTorch source intentionally uses 1/sqrt(n_embd)

    # fused [Wq*scale | Wk | Wv | Wproj | W1] -> one (C, 8C) MXU operand
    wa = jnp.concatenate([params["wq"] * scale, params["wk"], params["wv"],
                          params["wp"], params["w1"]], axis=1).astype(MM_DTYPE)
    w2 = params["w2"].astype(MM_DTYPE)

    # f32 slab: additive causal mask (rows 0..block_size-1) + 7 small vectors
    W = ((max(4 * C, block_size, 128) + 127) // 128) * 128
    R = ((block_size + 7 + 7) // 8) * 8
    slab = jnp.zeros((R, W), jnp.float32)
    tril = jnp.tril(jnp.ones((block_size, block_size), bool))
    slab = slab.at[0:block_size, 0:block_size].set(
        jnp.where(tril, 0.0, NEG_BIG).astype(jnp.float32))
    V = block_size
    slab = slab.at[V + 0, 0:C].set(params["ln1_g"].reshape(-1))
    slab = slab.at[V + 1, 0:C].set(params["ln1_b"].reshape(-1))
    slab = slab.at[V + 2, 0:C].set(params["ln2_g"].reshape(-1))
    slab = slab.at[V + 3, 0:C].set(params["ln2_b"].reshape(-1))
    slab = slab.at[V + 4, 0:C].set(params["bp"].reshape(-1))
    slab = slab.at[V + 5, 0:4 * C].set(params["b1"].reshape(-1))
    slab = slab.at[V + 6, 0:C].set(params["b2"].reshape(-1))
    return wa, w2, slab


def block_forward(x, prepared, *, rows_per_step=256, min_rows_for_split=256):
    wa, w2, slab = prepared
    B, T, C = x.shape
    assert C == n_embd and T <= block_size

    tb = _choose_batch_tile(B, T, rows_per_step, min_rows_for_split)
    rows = tb * T
    x2 = x.reshape(B * T, C)       # tokens as rows; trailing (lane) dim = C

    kernel = functools.partial(block_kernel, seq_len=T, batch_tile=tb)
    out = pl.pallas_call(
        kernel,
        out_shape=jax.ShapeDtypeStruct((B * T, C), x.dtype),
        grid_spec=pltpu.PrefetchScalarGridSpec(
            num_scalar_prefetch=0,
            grid=(B // tb,),
            in_specs=[
                pl.BlockSpec((rows, C), lambda i: (i, 0)),
                pl.BlockSpec(wa.shape, lambda i: (0, 0)),    # constant index:
                pl.BlockSpec(w2.shape, lambda i: (0, 0)),    # fetched once
                pl.BlockSpec(slab.shape, lambda i: (0, 0)),
            ],
            out_specs=pl.BlockSpec((rows, C), lambda i: (i, 0)),
        ),
        compiler_params=pltpu.CompilerParams(
            dimension_semantics=("parallel",)),
    )(x2, wa, w2, slab)
    return out.reshape(B, T, C)


def init_params(key):
    ks = jax.random.split(key, 8)
    s = 0.02
    f32 = jnp.float32
    return {
        "ln1_g": jnp.ones((1, n_embd), f32),
        "ln1_b": jnp.zeros((1, n_embd), f32),
        "wq": s * jax.random.normal(ks[0], (n_embd, n_embd), f32),
        "wk": s * jax.random.normal(ks[1], (n_embd, n_embd), f32),
        "wv": s * jax.random.normal(ks[2], (n_embd, n_embd), f32),
        "wp": s * jax.random.normal(ks[3], (n_embd, n_embd), f32),
        "bp": s * jax.random.normal(ks[4], (1, n_embd), f32),
        "ln2_g": jnp.ones((1, n_embd), f32),
        "ln2_b": jnp.zeros((1, n_embd), f32),
        "w1": s * jax.random.normal(ks[5], (n_embd, 4 * n_embd), f32),
        "b1": s * jax.random.normal(ks[6], (1, 4 * n_embd), f32),
        "w2": s * jax.random.normal(ks[7], (4 * n_embd, n_embd), f32),
        "b2": jnp.zeros((1, n_embd), f32),
    }


def block_reference(x, p):
    """Pure-JAX f32 reference matching the PyTorch forward (eval mode)."""
    def ln(z, g, b):
        mu = jnp.mean(z, axis=-1, keepdims=True)
        var = jnp.mean((z - mu) ** 2, axis=-1, keepdims=True)
        return (z - mu) / jnp.sqrt(var + EPS) * g + b

    B, T, C = x.shape
    xn = ln(x, p["ln1_g"], p["ln1_b"])
    q = xn @ p["wq"]; k = xn @ p["wk"]; v = xn @ p["wv"]
    qh = q.reshape(B, T, n_head, head_size).transpose(0, 2, 1, 3)
    kh = k.reshape(B, T, n_head, head_size).transpose(0, 2, 1, 3)
    vh = v.reshape(B, T, n_head, head_size).transpose(0, 2, 1, 3)
    wei = jnp.einsum("bhtd,bhsd->bhts", qh, kh) / (C ** 0.5)
    tril = jnp.tril(jnp.ones((T, T)))
    wei = jnp.where(tril == 0, -jnp.inf, wei)
    wei = jax.nn.softmax(wei, axis=-1)
    att = jnp.einsum("bhts,bhsd->bhtd", wei, vh).transpose(0, 2, 1, 3).reshape(B, T, C)
    x = x + att @ p["wp"] + p["bp"]
    xn2 = ln(x, p["ln2_g"], p["ln2_b"])
    ff = jnp.maximum(xn2 @ p["w1"] + p["b1"], 0.0) @ p["w2"] + p["b2"]
    return x + ff


if __name__ == "__main__":
    key = jax.random.PRNGKey(0)
    kx, kp = jax.random.split(key)
    B, T = 2, block_size
    x = jax.random.normal(kx, (B, T, n_embd), jnp.float32)
    params = init_params(kp)

    prepared = prepare_params(params)      # packed once, reused every call
    out = block_forward(x, prepared)
    jax.block_until_ready(out)

    ref = block_reference(x, params)
    assert out.shape == (B, T, n_embd)
    # bf16 MXU operands + approx reciprocal in softmax -> relaxed tolerance
    assert jnp.allclose(out, ref, atol=5e-3, rtol=5e-3), "mismatch vs reference"
    print("KERNEL_OK")
</pallas_src>

<mosaic_0001>
module attributes {stable_mosaic.version = 11 : i64} {
  func.func @block_kernel(%arg0: i32, %arg1: memref<16x32xf32, #tpu.memory_space<vmem>>, %arg2: memref<32x256xbf16, #tpu.memory_space<vmem>>, %arg3: memref<128x32xbf16, #tpu.memory_space<vmem>>, %arg4: memref<16x128xf32, #tpu.memory_space<vmem>>, %arg5: memref<16x32xf32, #tpu.memory_space<vmem>>) attributes {dimension_semantics = [#tpu.dimension_semantics<parallel>], iteration_bounds = array<i64: 1>, scalar_prefetch = 0 : i64, scratch_operands = 0 : i64, tpu.core_type = #tpu.core_type<tc>, window_params = [{transform_indices = @transform_0, window_bounds = array<i64: 16, 32>}, {pipeline_mode = #tpu.pipeline_mode<synchronous>, transform_indices = @transform_1, window_bounds = array<i64: 32, 256>}, {pipeline_mode = #tpu.pipeline_mode<synchronous>, transform_indices = @transform_2, window_bounds = array<i64: 128, 32>}, {pipeline_mode = #tpu.pipeline_mode<synchronous>, transform_indices = @transform_3, window_bounds = array<i64: 16, 128>}, {transform_indices = @transform_4, window_bounds = array<i64: 16, 32>}]} {
    %c0 = arith.constant 0 : index
    %c0_0 = arith.constant 0 : index
    %0 = vector.load %arg1[%c0, %c0_0] : memref<16x32xf32, #tpu.memory_space<vmem>>, vector<16x32xf32>
    %c0_1 = arith.constant 0 : index
    %c0_2 = arith.constant 0 : index
    %1 = vector.load %arg4[%c0_1, %c0_2] : memref<16x128xf32, #tpu.memory_space<vmem>>, vector<16x128xf32>
    %2 = vector.extract_strided_slice %1 {offsets = [0, 0], sizes = [8, 8], strides = [1, 1]} : vector<16x128xf32> to vector<8x8xf32>
    %3 = vector.extract_strided_slice %1 {offsets = [8, 0], sizes = [1, 32], strides = [1, 1]} : vector<16x128xf32> to vector<1x32xf32>
    %4 = vector.extract_strided_slice %1 {offsets = [9, 0], sizes = [1, 32], strides = [1, 1]} : vector<16x128xf32> to vector<1x32xf32>
    %5 = vector.extract_strided_slice %1 {offsets = [10, 0], sizes = [1, 32], strides = [1, 1]} : vector<16x128xf32> to vector<1x32xf32>
    %6 = vector.extract_strided_slice %1 {offsets = [11, 0], sizes = [1, 32], strides = [1, 1]} : vector<16x128xf32> to vector<1x32xf32>
    %7 = vector.extract_strided_slice %1 {offsets = [12, 0], sizes = [1, 32], strides = [1, 1]} : vector<16x128xf32> to vector<1x32xf32>
    %8 = vector.extract_strided_slice %1 {offsets = [13, 0], sizes = [1, 128], strides = [1, 1]} : vector<16x128xf32> to vector<1x128xf32>
    %9 = vector.extract_strided_slice %1 {offsets = [14, 0], sizes = [1, 32], strides = [1, 1]} : vector<16x128xf32> to vector<1x32xf32>
    %c0_3 = arith.constant 0 : index
    %c0_4 = arith.constant 0 : index
    %10 = vector.load %arg2[%c0_3, %c0_4] : memref<32x256xbf16, #tpu.memory_space<vmem>>, vector<32x256xbf16>
    %11 = vector.extract_strided_slice %10 {offsets = [0, 0], sizes = [32, 96], strides = [1, 1]} : vector<32x256xbf16> to vector<32x96xbf16>
    %12 = vector.extract_strided_slice %10 {offsets = [0, 96], sizes = [32, 32], strides = [1, 1]} : vector<32x256xbf16> to vector<32x32xbf16>
    %13 = vector.extract_strided_slice %10 {offsets = [0, 128], sizes = [32, 128], strides = [1, 1]} : vector<32x256xbf16> to vector<32x128xbf16>
    %c0_5 = arith.constant 0 : index
    %c0_6 = arith.constant 0 : index
    %14 = vector.load %arg3[%c0_5, %c0_6] : memref<128x32xbf16, #tpu.memory_space<vmem>>, vector<128x32xbf16>
    %cst = arith.constant dense<0.000000e+00> : vector<16xf32>
    %15 = vector.multi_reduction <add>, %0, %cst [1] : vector<16x32xf32> to vector<16xf32>
    %16 = vector.shape_cast %15 : vector<16xf32> to vector<16x1xf32>
    %cst_7 = arith.constant 3.200000e+01 : f32
    %17 = vector.broadcast %cst_7 : f32 to vector<16x1xf32>
    %18 = arith.divf %16, %17 : vector<16x1xf32>
    %19 = vector.broadcast %18 : vector<16x1xf32> to vector<16x32xf32>
    %20 = arith.subf %0, %19 : vector<16x32xf32>
    %21 = arith.mulf %20, %20 : vector<16x32xf32>
    %cst_8 = arith.constant dense<0.000000e+00> : vector<16xf32>
    %22 = vector.multi_reduction <add>, %21, %cst_8 [1] : vector<16x32xf32> to vector<16xf32>
    %23 = vector.shape_cast %22 : vector<16xf32> to vector<16x1xf32>
    %cst_9 = arith.constant 3.200000e+01 : f32
    %24 = vector.broadcast %cst_9 : f32 to vector<16x1xf32>
    %25 = arith.divf %23, %24 : vector<16x1xf32>
    %cst_10 = arith.constant 9.99999974E-6 : f32
    %26 = vector.broadcast %cst_10 : f32 to vector<16x1xf32>
    %27 = arith.addf %25, %26 : vector<16x1xf32>
    %28 = math.rsqrt %27 : vector<16x1xf32>
    %29 = vector.broadcast %28 : vector<16x1xf32> to vector<16x32xf32>
    %30 = arith.mulf %20, %29 : vector<16x32xf32>
    %31 = vector.broadcast %3 : vector<1x32xf32> to vector<16x32xf32>
    %32 = arith.mulf %30, %31 : vector<16x32xf32>
    %33 = vector.broadcast %4 : vector<1x32xf32> to vector<16x32xf32>
    %34 = arith.addf %32, %33 : vector<16x32xf32>
    %35 = arith.truncf %34 : vector<16x32xf32> to vector<16x32xbf16>
    %cst_11 = arith.constant dense<0.000000e+00> : vector<16x96xf32>
    %36 = tpu.matmul %35, %11, %cst_11 {dimension_numbers = #tpu.dot_dimension_numbers<[1], [0], [0], [1], [0, 0, 1, 1], [], []>} : vector<16x32xbf16>, vector<32x96xbf16>, vector<16x96xf32> -> vector<16x96xf32>
    %37 = vector.shape_cast %36 : vector<16x96xf32> to vector<2x8x96xf32>
    %cst_12 = arith.constant 0.000000e+00 : f32
    %38 = vector.broadcast %cst_12 : f32 to vector<16x32xf32>
    %39 = vector.extract_strided_slice %37 {offsets = [0, 0, 0], sizes = [2, 8, 8], strides = [1, 1, 1]} : vector<2x8x96xf32> to vector<2x8x8xf32>
    %40 = arith.truncf %39 : vector<2x8x8xf32> to vector<2x8x8xbf16>
    %41 = vector.extract_strided_slice %37 {offsets = [0, 0, 32], sizes = [2, 8, 8], strides = [1, 1, 1]} : vector<2x8x96xf32> to vector<2x8x8xf32>
    %42 = arith.truncf %41 : vector<2x8x8xf32> to vector<2x8x8xbf16>
    %43 = vector.extract_strided_slice %37 {offsets = [0, 0, 64], sizes = [2, 8, 8], strides = [1, 1, 1]} : vector<2x8x96xf32> to vector<2x8x8xf32>
    %44 = arith.truncf %43 : vector<2x8x8xf32> to vector<2x8x8xbf16>
    "tpu.trace_start"() <{level = 10 : i32, message = "btd,bsd->bts"}> : () -> ()
    %cst_13 = arith.constant dense<0.000000e+00> : vector<2x8x8xf32>
    %45 = tpu.matmul %40, %42, %cst_13 {dimension_numbers = #tpu.dot_dimension_numbers<[2], [2], [1], [1], [0, 0, 0, 1, 1, 1], [0], [0]>} : vector<2x8x8xbf16>, vector<2x8x8xbf16>, vector<2x8x8xf32> -> vector<2x8x8xf32>
    "tpu.trace_stop"() : () -> ()
    %46 = vector.shape_cast %2 : vector<8x8xf32> to vector<1x8x8xf32>
    %47 = vector.broadcast %46 : vector<1x8x8xf32> to vector<2x8x8xf32>
    %48 = arith.addf %45, %47 : vector<2x8x8xf32>
    %cst_14 = arith.constant dense<0xFF800000> : vector<2x8xf32>
    %49 = vector.multi_reduction <maximumf>, %48, %cst_14 [2] : vector<2x8x8xf32> to vector<2x8xf32>
    %50 = vector.shape_cast %49 : vector<2x8xf32> to vector<2x8x1xf32>
    %51 = vector.broadcast %50 : vector<2x8x1xf32> to vector<2x8x8xf32>
    %52 = arith.subf %48, %51 : vector<2x8x8xf32>
    %53 = math.exp %52 : vector<2x8x8xf32>
    %cst_15 = arith.constant dense<0.000000e+00> : vector<2x8xf32>
    %54 = vector.multi_reduction <add>, %53, %cst_15 [2] : vector<2x8x8xf32> to vector<2x8xf32>
    %55 = vector.shape_cast %54 : vector<2x8xf32> to vector<2x8x1xf32>
    %56 = tpu.reciprocal %55 {approx = true} : vector<2x8x1xf32> -> vector<2x8x1xf32>
    %57 = vector.broadcast %56 : vector<2x8x1xf32> to vector<2x8x8xf32>
    %58 = arith.mulf %53, %57 : vector<2x8x8xf32>
    %59 = arith.truncf %58 : vector<2x8x8xf32> to vector<2x8x8xbf16>
    "tpu.trace_start"() <{level = 10 : i32, message = "bts,bsd->btd"}> : () -> ()
    %cst_16 = arith.constant dense<0.000000e+00> : vector<2x8x8xf32>
    %60 = tpu.matmul %59, %44, %cst_16 {dimension_numbers = #tpu.dot_dimension_numbers<[2], [1], [1], [2], [0, 0, 0, 1, 1, 2], [0], [0]>} : vector<2x8x8xbf16>, vector<2x8x8xbf16>, vector<2x8x8xf32> -> vector<2x8x8xf32>
    "tpu.trace_stop"() : () -> ()
    %61 = vector.shape_cast %60 : vector<2x8x8xf32> to vector<16x8xf32>
    %62 = arith.truncf %61 : vector<16x8xf32> to vector<16x8xbf16>
    %63 = vector.extract_strided_slice %12 {offsets = [0, 0], sizes = [8, 32], strides = [1, 1]} : vector<32x32xbf16> to vector<8x32xbf16>
    %cst_17 = arith.constant dense<0.000000e+00> : vector<16x32xf32>
    %64 = tpu.matmul %62, %63, %cst_17 {dimension_numbers = #tpu.dot_dimension_numbers<[1], [0], [0], [1], [0, 0, 1, 1], [], []>} : vector<16x8xbf16>, vector<8x32xbf16>, vector<16x32xf32> -> vector<16x32xf32>
    %65 = arith.addf %38, %64 : vector<16x32xf32>
    %66 = vector.extract_strided_slice %37 {offsets = [0, 0, 8], sizes = [2, 8, 8], strides = [1, 1, 1]} : vector<2x8x96xf32> to vector<2x8x8xf32>
    %67 = arith.truncf %66 : vector<2x8x8xf32> to vector<2x8x8xbf16>
    %68 = vector.extract_strided_slice %37 {offsets = [0, 0, 40], sizes = [2, 8, 8], strides = [1, 1, 1]} : vector<2x8x96xf32> to vector<2x8x8xf32>
    %69 = arith.truncf %68 : vector<2x8x8xf32> to vector<2x8x8xbf16>
    %70 = vector.extract_strided_slice %37 {offsets = [0, 0, 72], sizes = [2, 8, 8], strides = [1, 1, 1]} : vector<2x8x96xf32> to vector<2x8x8xf32>
    %71 = arith.truncf %70 : vector<2x8x8xf32> to vector<2x8x8xbf16>
    "tpu.trace_start"() <{level = 10 : i32, message = "btd,bsd->bts"}> : () -> ()
    %cst_18 = arith.constant dense<0.000000e+00> : vector<2x8x8xf32>
    %72 = tpu.matmul %67, %69, %cst_18 {dimension_numbers = #tpu.dot_dimension_numbers<[2], [2], [1], [1], [0, 0, 0, 1, 1, 1], [0], [0]>} : vector<2x8x8xbf16>, vector<2x8x8xbf16>, vector<2x8x8xf32> -> vector<2x8x8xf32>
    "tpu.trace_stop"() : () -> ()
    %73 = vector.shape_cast %2 : vector<8x8xf32> to vector<1x8x8xf32>
    %74 = vector.broadcast %73 : vector<1x8x8xf32> to vector<2x8x8xf32>
    %75 = arith.addf %72, %74 : vector<2x8x8xf32>
    %cst_19 = arith.constant dense<0xFF800000> : vector<2x8xf32>
    %76 = vector.multi_reduction <maximumf>, %75, %cst_19 [2] : vector<2x8x8xf32> to vector<2x8xf32>
    %77 = vector.shape_cast %76 : vector<2x8xf32> to vector<2x8x1xf32>
    %78 = vector.broadcast %77 : vector<2x8x1xf32> to vector<2x8x8xf32>
    %79 = arith.subf %75, %78 : vector<2x8x8xf32>
    %80 = math.exp %79 : vector<2x8x8xf32>
    %cst_20 = arith.constant dense<0.000000e+00> : vector<2x8xf32>
    %81 = vector.multi_reduction <add>, %80, %cst_20 [2] : vector<2x8x8xf32> to vector<2x8xf32>
    %82 = vector.shape_cast %81 : vector<2x8xf32> to vector<2x8x1xf32>
    %83 = tpu.reciprocal %82 {approx = true} : vector<2x8x1xf32> -> vector<2x8x1xf32>
    %84 = vector.broadcast %83 : vector<2x8x1xf32> to vector<2x8x8xf32>
    %85 = arith.mulf %80, %84 : vector<2x8x8xf32>
    %86 = arith.truncf %85 : vector<2x8x8xf32> to vector<2x8x8xbf16>
    "tpu.trace_start"() <{level = 10 : i32, message = "bts,bsd->btd"}> : () -> ()
    %cst_21 = arith.constant dense<0.000000e+00> : vector<2x8x8xf32>
    %87 = tpu.matmul %86, %71, %cst_21 {dimension_numbers = #tpu.dot_dimension_numbers<[2], [1], [1], [2], [0, 0, 0, 1, 1, 2], [0], [0]>} : vector<2x8x8xbf16>, vector<2x8x8xbf16>, vector<2x8x8xf32> -> vector<2x8x8xf32>
    "tpu.trace_stop"() : () -> ()
    %88 = vector.shape_cast %87 : vector<2x8x8xf32> to vector<16x8xf32>
    %89 = arith.truncf %88 : vector<16x8xf32> to vector<16x8xbf16>
    %90 = vector.extract_strided_slice %12 {offsets = [8, 0], sizes = [8, 32], strides = [1, 1]} : vector<32x32xbf16> to vector<8x32xbf16>
    %cst_22 = arith.constant dense<0.000000e+00> : vector<16x32xf32>
    %91 = tpu.matmul %89, %90, %cst_22 {dimension_numbers = #tpu.dot_dimension_numbers<[1], [0], [0], [1], [0, 0, 1, 1], [], []>} : vector<16x8xbf16>, vector<8x32xbf16>, vector<16x32xf32> -> vector<16x32xf32>
    %92 = arith.addf %65, %91 : vector<16x32xf32>
    %93 = vector.extract_strided_slice %37 {offsets = [0, 0, 16], sizes = [2, 8, 8], strides = [1, 1, 1]} : vector<2x8x96xf32> to vector<2x8x8xf32>
    %94 = arith.truncf %93 : vector<2x8x8xf32> to vector<2x8x8xbf16>
    %95 = vector.extract_strided_slice %37 {offsets = [0, 0, 48], sizes = [2, 8, 8], strides = [1, 1, 1]} : vector<2x8x96xf32> to vector<2x8x8xf32>
    %96 = arith.truncf %95 : vector<2x8x8xf32> to vector<2x8x8xbf16>
    %97 = vector.extract_strided_slice %37 {offsets = [0, 0, 80], sizes = [2, 8, 8], strides = [1, 1, 1]} : vector<2x8x96xf32> to vector<2x8x8xf32>
    %98 = arith.truncf %97 : vector<2x8x8xf32> to vector<2x8x8xbf16>
    "tpu.trace_start"() <{level = 10 : i32, message = "btd,bsd->bts"}> : () -> ()
    %cst_23 = arith.constant dense<0.000000e+00> : vector<2x8x8xf32>
    %99 = tpu.matmul %94, %96, %cst_23 {dimension_numbers = #tpu.dot_dimension_numbers<[2], [2], [1], [1], [0, 0, 0, 1, 1, 1], [0], [0]>} : vector<2x8x8xbf16>, vector<2x8x8xbf16>, vector<2x8x8xf32> -> vector<2x8x8xf32>
    "tpu.trace_stop"() : () -> ()
    %100 = vector.shape_cast %2 : vector<8x8xf32> to vector<1x8x8xf32>
    %101 = vector.broadcast %100 : vector<1x8x8xf32> to vector<2x8x8xf32>
    %102 = arith.addf %99, %101 : vector<2x8x8xf32>
    %cst_24 = arith.constant dense<0xFF800000> : vector<2x8xf32>
    %103 = vector.multi_reduction <maximumf>, %102, %cst_24 [2] : vector<2x8x8xf32> to vector<2x8xf32>
    %104 = vector.shape_cast %103 : vector<2x8xf32> to vector<2x8x1xf32>
    %105 = vector.broadcast %104 : vector<2x8x1xf32> to vector<2x8x8xf32>
    %106 = arith.subf %102, %105 : vector<2x8x8xf32>
    %107 = math.exp %106 : vector<2x8x8xf32>
    %cst_25 = arith.constant dense<0.000000e+00> : vector<2x8xf32>
    %108 = vector.multi_reduction <add>, %107, %cst_25 [2] : vector<2x8x8xf32> to vector<2x8xf32>
    %109 = vector.shape_cast %108 : vector<2x8xf32> to vector<2x8x1xf32>
    %110 = tpu.reciprocal %109 {approx = true} : vector<2x8x1xf32> -> vector<2x8x1xf32>
    %111 = vector.broadcast %110 : vector<2x8x1xf32> to vector<2x8x8xf32>
    %112 = arith.mulf %107, %111 : vector<2x8x8xf32>
    %113 = arith.truncf %112 : vector<2x8x8xf32> to vector<2x8x8xbf16>
    "tpu.trace_start"() <{level = 10 : i32, message = "bts,bsd->btd"}> : () -> ()
    %cst_26 = arith.constant dense<0.000000e+00> : vector<2x8x8xf32>
    %114 = tpu.matmul %113, %98, %cst_26 {dimension_numbers = #tpu.dot_dimension_numbers<[2], [1], [1], [2], [0, 0, 0, 1, 1, 2], [0], [0]>} : vector<2x8x8xbf16>, vector<2x8x8xbf16>, vector<2x8x8xf32> -> vector<2x8x8xf32>
    "tpu.trace_stop"() : () -> ()
    %115 = vector.shape_cast %114 : vector<2x8x8xf32> to vector<16x8xf32>
    %116 = arith.truncf %115 : vector<16x8xf32> to vector<16x8xbf16>
    %117 = vector.extract_strided_slice %12 {offsets = [16, 0], sizes = [8, 32], strides = [1, 1]} : vector<32x32xbf16> to vector<8x32xbf16>
    %cst_27 = arith.constant dense<0.000000e+00> : vector<16x32xf32>
    %118 = tpu.matmul %116, %117, %cst_27 {dimension_numbers = #tpu.dot_dimension_numbers<[1], [0], [0], [1], [0, 0, 1, 1], [], []>} : vector<16x8xbf16>, vector<8x32xbf16>, vector<16x32xf32> -> vector<16x32xf32>
    %119 = arith.addf %92, %118 : vector<16x32xf32>
    %120 = vector.extract_strided_slice %37 {offsets = [0, 0, 24], sizes = [2, 8, 8], strides = [1, 1, 1]} : vector<2x8x96xf32> to vector<2x8x8xf32>
    %121 = arith.truncf %120 : vector<2x8x8xf32> to vector<2x8x8xbf16>
    %122 = vector.extract_strided_slice %37 {offsets = [0, 0, 56], sizes = [2, 8, 8], strides = [1, 1, 1]} : vector<2x8x96xf32> to vector<2x8x8xf32>
    %123 = arith.truncf %122 : vector<2x8x8xf32> to vector<2x8x8xbf16>
    %124 = vector.extract_strided_slice %37 {offsets = [0, 0, 88], sizes = [2, 8, 8], strides = [1, 1, 1]} : vector<2x8x96xf32> to vector<2x8x8xf32>
    %125 = arith.truncf %124 : vector<2x8x8xf32> to vector<2x8x8xbf16>
    "tpu.trace_start"() <{level = 10 : i32, message = "btd,bsd->bts"}> : () -> ()
    %cst_28 = arith.constant dense<0.000000e+00> : vector<2x8x8xf32>
    %126 = tpu.matmul %121, %123, %cst_28 {dimension_numbers = #tpu.dot_dimension_numbers<[2], [2], [1], [1], [0, 0, 0, 1, 1, 1], [0], [0]>} : vector<2x8x8xbf16>, vector<2x8x8xbf16>, vector<2x8x8xf32> -> vector<2x8x8xf32>
    "tpu.trace_stop"() : () -> ()
    %127 = vector.shape_cast %2 : vector<8x8xf32> to vector<1x8x8xf32>
    %128 = vector.broadcast %127 : vector<1x8x8xf32> to vector<2x8x8xf32>
    %129 = arith.addf %126, %128 : vector<2x8x8xf32>
    %cst_29 = arith.constant dense<0xFF800000> : vector<2x8xf32>
    %130 = vector.multi_reduction <maximumf>, %129, %cst_29 [2] : vector<2x8x8xf32> to vector<2x8xf32>
    %131 = vector.shape_cast %130 : vector<2x8xf32> to vector<2x8x1xf32>
    %132 = vector.broadcast %131 : vector<2x8x1xf32> to vector<2x8x8xf32>
    %133 = arith.subf %129, %132 : vector<2x8x8xf32>
    %134 = math.exp %133 : vector<2x8x8xf32>
    %cst_30 = arith.constant dense<0.000000e+00> : vector<2x8xf32>
    %135 = vector.multi_reduction <add>, %134, %cst_30 [2] : vector<2x8x8xf32> to vector<2x8xf32>
    %136 = vector.shape_cast %135 : vector<2x8xf32> to vector<2x8x1xf32>
    %137 = tpu.reciprocal %136 {approx = true} : vector<2x8x1xf32> -> vector<2x8x1xf32>
    %138 = vector.broadcast %137 : vector<2x8x1xf32> to vector<2x8x8xf32>
    %139 = arith.mulf %134, %138 : vector<2x8x8xf32>
    %140 = arith.truncf %139 : vector<2x8x8xf32> to vector<2x8x8xbf16>
    "tpu.trace_start"() <{level = 10 : i32, message = "bts,bsd->btd"}> : () -> ()
    %cst_31 = arith.constant dense<0.000000e+00> : vector<2x8x8xf32>
    %141 = tpu.matmul %140, %125, %cst_31 {dimension_numbers = #tpu.dot_dimension_numbers<[2], [1], [1], [2], [0, 0, 0, 1, 1, 2], [0], [0]>} : vector<2x8x8xbf16>, vector<2x8x8xbf16>, vector<2x8x8xf32> -> vector<2x8x8xf32>
    "tpu.trace_stop"() : () -> ()
    %142 = vector.shape_cast %141 : vector<2x8x8xf32> to vector<16x8xf32>
    %143 = arith.truncf %142 : vector<16x8xf32> to vector<16x8xbf16>
    %144 = vector.extract_strided_slice %12 {offsets = [24, 0], sizes = [8, 32], strides = [1, 1]} : vector<32x32xbf16> to vector<8x32xbf16>
    %cst_32 = arith.constant dense<0.000000e+00> : vector<16x32xf32>
    %145 = tpu.matmul %143, %144, %cst_32 {dimension_numbers = #tpu.dot_dimension_numbers<[1], [0], [0], [1], [0, 0, 1, 1], [], []>} : vector<16x8xbf16>, vector<8x32xbf16>, vector<16x32xf32> -> vector<16x32xf32>
    %146 = arith.addf %119, %145 : vector<16x32xf32>
    %147 = arith.addf %0, %146 : vector<16x32xf32>
    %148 = vector.broadcast %7 : vector<1x32xf32> to vector<16x32xf32>
    %149 = arith.addf %147, %148 : vector<16x32xf32>
    %cst_33 = arith.constant dense<0.000000e+00> : vector<16xf32>
    %150 = vector.multi_reduction <add>, %149, %cst_33 [1] : vector<16x32xf32> to vector<16xf32>
    %151 = vector.shape_cast %150 : vector<16xf32> to vector<16x1xf32>
    %cst_34 = arith.constant 3.200000e+01 : f32
    %152 = vector.broadcast %cst_34 : f32 to vector<16x1xf32>
    %153 = arith.divf %151, %152 : vector<16x1xf32>
    %154 = vector.broadcast %153 : vector<16x1xf32> to vector<16x32xf32>
    %155 = arith.subf %149, %154 : vector<16x32xf32>
    %156 = arith.mulf %155, %155 : vector<16x32xf32>
    %cst_35 = arith.constant dense<0.000000e+00> : vector<16xf32>
    %157 = vector.multi_reduction <add>, %156, %cst_35 [1] : vector<16x32xf32> to vector<16xf32>
    %158 = vector.shape_cast %157 : vector<16xf32> to vector<16x1xf32>
    %cst_36 = arith.constant 3.200000e+01 : f32
    %159 = vector.broadcast %cst_36 : f32 to vector<16x1xf32>
    %160 = arith.divf %158, %159 : vector<16x1xf32>
    %cst_37 = arith.constant 9.99999974E-6 : f32
    %161 = vector.broadcast %cst_37 : f32 to vector<16x1xf32>
    %162 = arith.addf %160, %161 : vector<16x1xf32>
    %163 = math.rsqrt %162 : vector<16x1xf32>
    %164 = vector.broadcast %163 : vector<16x1xf32> to vector<16x32xf32>
    %165 = arith.mulf %155, %164 : vector<16x32xf32>
    %166 = vector.broadcast %5 : vector<1x32xf32> to vector<16x32xf32>
    %167 = arith.mulf %165, %166 : vector<16x32xf32>
    %168 = vector.broadcast %6 : vector<1x32xf32> to vector<16x32xf32>
    %169 = arith.addf %167, %168 : vector<16x32xf32>
    %170 = arith.truncf %169 : vector<16x32xf32> to vector<16x32xbf16>
    %cst_38 = arith.constant dense<0.000000e+00> : vector<16x128xf32>
    %171 = tpu.matmul %170, %13, %cst_38 {dimension_numbers = #tpu.dot_dimension_numbers<[1], [0], [0], [1], [0, 0, 1, 1], [], []>} : vector<16x32xbf16>, vector<32x128xbf16>, vector<16x128xf32> -> vector<16x128xf32>
    %172 = vector.broadcast %8 : vector<1x128xf32> to vector<16x128xf32>
    %173 = arith.addf %171, %172 : vector<16x128xf32>
    %cst_39 = arith.constant 0.000000e+00 : f32
    %174 = vector.broadcast %cst_39 : f32 to vector<16x128xf32>
    %175 = arith.maximumf %173, %174 : vector<16x128xf32>
    %176 = arith.truncf %175 : vector<16x128xf32> to vector<16x128xbf16>
    %cst_40 = arith.constant dense<0.000000e+00> : vector<16x32xf32>
    %177 = tpu.matmul %176, %14, %cst_40 {dimension_numbers = #tpu.dot_dimension_numbers<[1], [0], [0], [1], [0, 0, 1, 1], [], []>} : vector<16x128xbf16>, vector<128x32xbf16>, vector<16x32xf32> -> vector<16x32xf32>
    %178 = vector.broadcast %9 : vector<1x32xf32> to vector<16x32xf32>
    %179 = arith.addf %177, %178 : vector<16x32xf32>
    %180 = arith.addf %149, %179 : vector<16x32xf32>
    %c0_41 = arith.constant 0 : index
    %c0_42 = arith.constant 0 : index
    %181 = vector.load %arg5[%c0_41, %c0_42] : memref<16x32xf32, #tpu.memory_space<vmem>>, vector<16x32xf32>
    tpu.vector_store %arg5[%c0_41, %c0_42], %180 {strides = array<i32>} : memref<16x32xf32, #tpu.memory_space<vmem>>, vector<16x32xf32>,
    return
  }
  func.func @transform_0(%arg0: i32) -> (i32, i32) {
    %c0_i32 = arith.constant 0 : i32
    %c0_i32_0 = arith.constant 0 : i32
    return %arg0, %c0_i32 : i32, i32
  }
  func.func @transform_1(%arg0: i32) -> (i32, i32) {
    %c0_i32 = arith.constant 0 : i32
    %c0_i32_0 = arith.constant 0 : i32
    %c0_i32_1 = arith.constant 0 : i32
    return %c0_i32, %c0_i32_0 : i32, i32
  }
  func.func @transform_2(%arg0: i32) -> (i32, i32) {
    %c0_i32 = arith.constant 0 : i32
    %c0_i32_0 = arith.constant 0 : i32
    %c0_i32_1 = arith.constant 0 : i32
    return %c0_i32, %c0_i32_0 : i32, i32
  }
  func.func @transform_3(%arg0: i32) -> (i32, i32) {
    %c0_i32 = arith.constant 0 : i32
    %c0_i32_0 = arith.constant 0 : i32
    %c0_i32_1 = arith.constant 0 : i32
    return %c0_i32, %c0_i32_0 : i32, i32
  }
  func.func @transform_4(%arg0: i32) -> (i32, i32) {
    %c0_i32 = arith.constant 0 : i32
    %c0_i32_0 = arith.constant 0 : i32
    return %arg0, %c0_i32 : i32, i32
  }
}

</mosaic_0001>

<bundles_post_ra>
// kernel: tpu_custom_call.1
= control target key start
LH: loop header
LB: loop body
LE: loop exit
PB: predicated region body
PF: predicated region fallthrough
CT: control target
= control target key end

     0   :  { %vm43_vm0 = vcmask 261120   ;;  %s2176_s0 = inlined_call_operand.vmem [shape: f32[16,32], index: 0, kind: input, shape index: {}]   ;;  %s2177_s1 = inlined_call_operand.vmem [shape: bf16[32,256], index: 1, kind: input, shape index: {}]   ;;  %s2178_s2 = inlined_call_operand.vmem [shape: bf16[128,32], index: 2, kind: input, shape index: {}]   ;;  %s2179_s3 = inlined_call_operand.vmem [shape: f32[16,128], index: 3, kind: input, shape index: {}]   ;;  %s2180_s4 = inlined_call_operand.hbm [shape: f32[16,32], index: 4, kind: output, shape index: {}]  }
   0x1   :  { %v1840_v0 = vld [vmem:[%s2176_s0] sm:$0xff]  ;;  %v1845_v1 = vld [vmem:[%s2176_s0 + $0x8] sm:$0xff] }
   0x2   :  { %v44_v2 = vsel %vm43_vm0, %v1840_v0, 0.0  ;;  %v47_v3 = vsel %vm43_vm0, %v1845_v1, 0.0 }
   0x3   :  { %45 = vadd.xlane.f32.xlu0 %v44_v2 }
   0x7   :  { %48 = vadd.xlane.f32.xlu0 %v47_v3 }
   0x8   :  { %9 = vsyncpa [#allocation3], 0  ;;  %v1858_v14 = vld [vmem:[%s2177_s1] sm:$0xff]  ;;  %v1863_v15 = vld [vmem:[%s2177_s1 + $0x8] sm:$0xff]  ;;  %v1795_v17 = vmov 0.0   ;;  %vm1796_vm1 = vmmov 0   ;;  %v71_v25 = vlaneseq }
   0x9   :  { %v1449_v16 = vcombine.low %v1858_v14, %v1863_v15  ;;  %1542 = vmatprep.subr.bf16.mxu1 %v1795_v17  ;;  %v1871_v18 = vld [vmem:[%s2177_s1 + $0x10] sm:$0xff]  ;;  %v1876_v19 = vld [vmem:[%s2177_s1 + $0x18] sm:$0xff]  ;;  %1568 = vmatprep.subr.bf16.mxu0 %v1795_v17  ;;  %v1893_v30 = vld [vmem:[%s2179_s3 + $0x8] sm:$0xff]  ;;  %s1797_s27 = smov 96   ;;  %vm145_vm2 = vcmask 64512   ;;  %s1799_s30 = smov 88  }
   0xa   :  { %v1450_v20 = vcombine.low %v1871_v18, %v1876_v19  ;;  %1546 = vmatprep.mubr.msk.bf16.mxu1 %vm1796_vm1, %v1795_v17  ;;  %1570 = vmatprep.mubr.msk.bf16.mxu0 %vm1796_vm1, %v1795_v17  ;;  %v1887_v28 = vshrl.u32 %v71_v25, 7  ;;  %v1922_v53 = vld [vmem:[%s2179_s3] sm:$0xff]  ;;  %s1798_s3 = smov 64   ;;  %vm270_vm3 = vcmask 1043456   ;;  %s1800_s5 = smov 120  }
   0xb   :  { %1543 = vmatpush3.bf16.msra.mxu1 %v1449_v16  ;;  %s1801_s6 = smov 56   ;;  %s1802_s7 = smov 32  }
   0xc   :  { %1544 = vmatprep.subr.bf16.mxu1 %v1795_v17  ;;  %v73_v29 = vsub.s32 0, %v1887_v28  ;;  %v79_v34 = vsub.s32 1, %v1887_v28  ;;  %s1803_s8 = smov 80   ;;  %s1804_s9 = smov 112  }
   0xd   :  { %s1805_s10 = smov 48   ;;  %s1806_s11 = smov 72  }
   0xe   :  { %v74_v33 = vrot.slane %v1893_v30, %v73_v29  ;;  %v80_v38 = vrot.slane %v1893_v30, %v79_v34  ;;  %s1807_s12 = smov 104   ;;  %s1808_s13 = smov 40  }
   0xf   :  { %1545 = vmatpush3.bf16.msra.mxu1 %v1450_v20 }
  0x10   :  { %1550 = vmatprep.subr.bf16.mxu1 %v1795_v17 }
  0x90   :  { %v46_v4 = vpop.xlane.xlu0 %45 }
  0x91   :  { %v51_v5 = vmul.f32 0.03125, %v46_v4 }
  0x93   :  { %v53_v6 = vsub.f32 %v1840_v0, %v51_v5 }
  0x94   :  { %v49_v7 = vpop.xlane.xlu0 %48 }
  0x95   :  { %v52_v8 = vmul.f32 0.03125, %v49_v7  ;;  %v55_v9 = vmul.f32 %v53_v6, %v53_v6 }
  0x97   :  { %v54_v10 = vsub.f32 %v1845_v1, %v52_v8  ;;  %v57_v11 = vsel %vm43_vm0, %v55_v9, 0.0 }
  0x98   :  { %58 = vadd.xlane.f32.xlu1 %v57_v11 }
  0x99   :  { %v56_v12 = vmul.f32 %v54_v10, %v54_v10 }
  0x9b   :  { %v60_v13 = vsel %vm43_vm0, %v56_v12, 0.0 }
  0x9c   :  { %61 = vadd.xlane.f32.xlu1 %v60_v13 }
 0x125   :  { %v59_v21 = vpop.xlane.xlu1 %58 }
 0x126   :  { %v63_v22 = vmul.f32 0.03125, %v59_v21 }
 0x128   :  { %v65_v23 = vadd.f32 1e-05, %v63_v22 }
 0x129   :  { %v62_v24 = vpop.xlane.xlu1 %61 }
 0x12a   :  { %1731 = vrsqrt.f32 %v65_v23  ;;  %v64_v26 = vmul.f32 0.03125, %v62_v24 }
 0x12c   :  { %v66_v27 = vadd.f32 1e-05, %v64_v26 }
 0x12e   :  { %1733 = vrsqrt.f32 %v66_v27 }
 0x134   :  { %v1732_v31 = vpop.eup %1731 }
 0x135   :  { %v69_v32 = vmul.f32 %v1732_v31, %v53_v6 }
 0x137   :  { %v75_v37 = vmul.f32 %v74_v33, %v69_v32 }
 0x138   :  { %v1734_v35 = vpop.eup %1733 }
 0x139   :  { %v70_v36 = vmul.f32 %v1734_v35, %v54_v10  ;;  %v81_v40 = vadd.f32 %v80_v38, %v75_v37 }
 0x13b   :  { %v76_v39 = vmul.f32 %v74_v33, %v70_v36 }
 0x13d   :  { %v82_v41 = vadd.f32 %v80_v38, %v76_v39 }
 0x13f   :  { %v83_v42 = vpack.c.bf16 %v82_v41, %v81_v40 }
 0x141   :  { %1547 = vmatmul.mubr.msk.bf16.vlgmr.msra.gmra.mrb[0].mxu1 %vm43_vm0, %v83_v42 }
 0x142   :  { %1552 = vmatprep.mubr.msk.bf16.mxu1 %vm1796_vm1, %v1795_v17 }
 0x214   :  { %v133_v43 = vpop.f32.mrb[0].mxu1 }
 0x215   :  { %v1901_v44 = vpack.c.bf16 %v133_v43, %v133_v43  ;;  %v1548_v45 = vpop.f32.mrb[1].mxu1 }
 0x216   :  { %v136_v46 = vpop.f32.mrb[2].mxu1 }
 0x217   :  { %v1903_v47 = vpack.c.bf16 %v136_v46, %v136_v46  ;;  %143 = vrot.lane.b32.xlu0 %v1901_v44, %s1797_s27  ;;  %v1549_v48 = vpop.f32.mrb[3].mxu1 }
 0x219   :  { %193 = vrot.lane.b32.xlu1 %v1903_v47, %s1797_s27 }
 0x289   :  { %v144_v49 = vpop.permute.xlu0 %143 }
 0x28a   :  { %v150_v50 = vsel %vm145_vm2, %v144_v49, 0 }
 0x28b   :  { %1551 = vmatpush3.bf16.xpose.msra.mxu1 %v150_v50  ;;  %v194_v51 = vpop.permute.xlu1 %193 }
 0x28c   :  { %1556 = vmatprep.subr.bf16.mxu1 %v1795_v17  ;;  %v199_v52 = vsel %vm145_vm2, %v194_v51, 0 }
 0x292   :  { %1553 = vmatmul.mubr.msk.bf16.vlgmr.msra.gmra.mrb[4].mxu1 %vm145_vm2, %v1901_v44 }
 0x293   :  { %1557 = vmatpush3.bf16.xpose.msra.mxu1 %v199_v52  ;;  %1558 = vmatprep.mubr.msk.bf16.mxu1 %vm1796_vm1, %v1795_v17 }
 0x294   :  { %1562 = vmatprep.subr.bf16.mxu1 %v1795_v17 }
 0x29a   :  { %1559 = vmatmul.mubr.msk.bf16.vlgmr.msra.gmra.mrb[8].mxu1 %vm145_vm2, %v1903_v47 }
 0x29b   :  { %1564 = vmatprep.mubr.msk.bf16.mxu1 %vm1796_vm1, %v1795_v17 }
 0x365   :  { %v186_v54 = vpop.f32.mrb[4].mxu1 }
 0x366   :  { %v187_v55 = vadd.f32 %v186_v54, %v1922_v53  ;;  %v1554_v56 = vpop.f32.mrb[5].mxu1 }
 0x367   :  { %v189_v57 = vpop.f32.mrb[6].mxu1 }
 0x368   :  { %v1555_v58 = vpop.f32.mrb[7].mxu1  ;;  %v241_v59 = vsel %vm145_vm2, %v187_v55, -inf }
 0x369   :  { %242 = vmax.xlane.f32.xlu1 %v241_v59 }
 0x36d   :  { %v235_v60 = vpop.f32.mrb[8].mxu1 }
 0x36e   :  { %v236_v61 = vadd.f32 %v235_v60, %v1922_v53  ;;  %v1560_v62 = vpop.f32.mrb[9].mxu1 }
 0x36f   :  { %v238_v63 = vpop.f32.mrb[10].mxu1 }
 0x370   :  { %v1561_v2 = vpop.f32.mrb[11].mxu1  ;;  %v244_v3 = vsel %vm145_vm2, %v236_v61, -inf  ;;  %v1460_v63 = vcombine.low %v1863_v15, %v1863_v15 }
 0x371   :  { %245 = vmax.xlane.f32.xlu0 %v244_v3  ;;  %v1462_v2 = vcombine.low %v1858_v14, %v1858_v14 }
 0x37a   :  { %314 = vrot.lane.b32.xlu1 %v1903_v47, %s1798_s3 }
 0x37e   :  { %365 = vrot.lane.b32.xlu1 %v1901_v44, %s1799_s30 }
 0x3f6   :  { %v243_v4 = vpop.xlane.xlu1 %242 }
 0x3f7   :  { %v247_v5 = vsub.f32 %v187_v55, %v243_v4 }
 0x3f9   :  { %v249_v6 = vmul.f32 1.442695, %v247_v5 }
 0x3fa   :  { %v315_v7 = vpop.permute.xlu1 %314 }
 0x3fb   :  { %1735 = vpow2.f32 %v249_v6  ;;  %v320_v8 = vsel %vm270_vm3, %v315_v7, 0 }
 0x3fc   :  { %1569 = vmatpush3.bf16.msra.mxu0 %v320_v8 }
 0x3fd   :  { %1580 = vmatprep.subr.bf16.mxu0 %v1795_v17 }
 0x3fe   :  { %v246_v9 = vpop.xlane.xlu0 %245  ;;  %v366_v22 = vpop.permute.xlu1 %365 }
 0x3ff   :  { %v248_v10 = vsub.f32 %v236_v61, %v246_v9  ;;  %v371_v31 = vsel %vm145_vm2, %v366_v22, 0 }
 0x401   :  { %v251_v11 = vmul.f32 1.442695, %v248_v10 }
 0x403   :  { %1737 = vpow2.f32 %v251_v11 }
 0x405   :  { %v1736_v12 = vpop.eup %1735 }
 0x406   :  { %v253_v13 = vsel %vm145_vm2, %v1736_v12, 0.0 }
 0x407   :  { %254 = vadd.xlane.f32.xlu0 %v253_v13 }
 0x40d   :  { %v1738_v16 = vpop.eup %1737 }
 0x40e   :  { %v256_v20 = vsel %vm145_vm2, %v1738_v16, 0.0 }
 0x40f   :  { %257 = vadd.xlane.f32.xlu1 %v256_v20 }
 0x41d   :  { %265 = vrot.lane.b32.xlu0 %v1901_v44, %s1798_s3 }
 0x420   :  { %415 = vrot.lane.b32.xlu1 %v1903_v47, %s1799_s30 }
 0x421   :  { %363 = vrot.lane.b32.xlu0 %v1901_v44, %s1800_s5 }
 0x424   :  { %413 = vrot.lane.b32.xlu1 %v1903_v47, %s1800_s5 }
 0x494   :  { %v255_v21 = vpop.xlane.xlu0 %254 }
 0x495   :  { %1739 = vrcp.f32 %v255_v21 }
 0x498   :  { %v266_v23 = vpop.permute.xlu0 %265 }
 0x499   :  { %v272_v24 = vsel %vm270_vm3, %v266_v23, 0 }
 0x49a   :  { %1563 = vmatpush3.bf16.msra.mxu1 %v272_v24 }
 0x49b   :  { %1574 = vmatprep.subr.bf16.mxu1 %v1795_v17 }
 0x49c   :  { %v258_v25 = vpop.xlane.xlu1 %257  ;;  %v364_v36 = vpop.permute.xlu0 %363 }
 0x49d   :  { %1741 = vrcp.f32 %v258_v25 }
 0x49f   :  { %v1740_v26 = vpop.eup %1739 }
 0x4a0   :  { %v261_v27 = vmul.f32 %v1740_v26, %v1736_v12  ;;  %v416_v34 = vpop.permute.xlu1 %415 }
 0x4a1   :  { %v421_v37 = vsel %vm145_vm2, %v416_v34, 0 }
 0x4a2   :  { %v263_v29 = vpack.c.bf16 %v261_v27, %v261_v27 }
 0x4a4   :  { %1565 = vmatmul.mubr.msk.bf16.vlgmr.msra.gmra.mrb[12].mxu1 %vm145_vm2, %v263_v29  ;;  %v414_v38 = vpop.permute.xlu1 %413 }
 0x4a5   :  { %1575 = vmatpush3.bf16.xpose.msra.mxu1 %v371_v31  ;;  %1576 = vmatprep.mubr.msk.bf16.mxu1 %vm1796_vm1, %v1795_v17 }
 0x4a6   :  { %1586 = vmatprep.subr.bf16.mxu1 %v1795_v17 }
 0x4a7   :  { %v1742_v32 = vpop.eup %1741 }
 0x4a8   :  { %v262_v33 = vmul.f32 %v1742_v32, %v1738_v16 }
 0x4aa   :  { %v264_v35 = vpack.c.bf16 %v262_v33, %v262_v33 }
 0x4ac   :  { %1571 = vmatmul.mubr.msk.bf16.vlgmr.msra.gmra.mrb[0].mxu0 %vm145_vm2, %v264_v35  ;;  %1577 = vmatmul.mubr.msk.bf16.vlgmr.msra.gmra.mrb[16].mxu1 %vm145_vm2, %v364_v36 }
 0x4ad   :  { %1581 = vmatpush3.bf16.xpose.msra.mxu0 %v421_v37  ;;  %1582 = vmatprep.mubr.msk.bf16.mxu0 %vm1796_vm1, %v1795_v17 }
 0x4ae   :  { %1592 = vmatprep.subr.bf16.mxu0 %v1795_v17  ;;  %1588 = vmatprep.mubr.msk.bf16.mxu1 %vm1796_vm1, %v1795_v17 }
 0x4b4   :  { %1583 = vmatmul.mubr.msk.bf16.vlgmr.msra.gmra.mrb[4].mxu0 %vm145_vm2, %v414_v38 }
 0x4b5   :  { %1594 = vmatprep.mubr.msk.bf16.mxu0 %vm1796_vm1, %v1795_v17 }
 0x577   :  { %v1956_v39 = vpop.f32.mrb[12].mxu1 }
 0x578   :  { %v1566_v40 = vpop.f32.mrb[13].mxu1 }
 0x579   :  { %v311_v41 = vpop.f32.mrb[14].mxu1 }
 0x57a   :  { %v1567_v42 = vpop.f32.mrb[15].mxu1 }
 0x57f   :  { %v1958_v43 = vpop.f32.mrb[0].mxu0  ;;  %v407_v45 = vpop.f32.mrb[16].mxu1 }
 0x580   :  { %v362_v46 = vpack.c.bf16 %v1958_v43, %v1956_v39  ;;  %v408_v48 = vadd.f32 %v407_v45, %v1922_v53  ;;  %v1572_v49 = vpop.f32.mrb[1].mxu0  ;;  %v1578_v50 = vpop.f32.mrb[17].mxu1 }
 0x581   :  { %v359_v51 = vpop.f32.mrb[2].mxu0  ;;  %v410_v52 = vpop.f32.mrb[18].mxu1 }
 0x582   :  { %v1573_v54 = vpop.f32.mrb[3].mxu0  ;;  %v1579_v55 = vpop.f32.mrb[19].mxu1  ;;  %v463_v56 = vsel %vm145_vm2, %v408_v48, -inf }
 0x583   :  { %464 = vmax.xlane.f32.xlu0 %v463_v56 }
 0x587   :  { %v457_v57 = vpop.f32.mrb[4].mxu0 }
 0x588   :  { %v458_v58 = vadd.f32 %v457_v57, %v1922_v53  ;;  %v1584_v59 = vpop.f32.mrb[5].mxu0 }
 0x589   :  { %v460_v60 = vpop.f32.mrb[6].mxu0 }
 0x58a   :  { %v1585_v61 = vpop.f32.mrb[7].mxu0  ;;  %v466_v62 = vsel %vm145_vm2, %v458_v58, -inf }
 0x58b   :  { %467 = vmax.xlane.f32.xlu1 %v466_v62 }
 0x59c   :  { %535 = vrot.lane.b32.xlu1 %v1903_v47, %s1801_s6 }
 0x5a0   :  { %585 = vrot.lane.b32.xlu1 %v1460_v63, %s1802_s7 }
 0x5a4   :  { %635 = vrot.lane.b32.xlu1 %v1462_v2, %s1802_s7  ;;  %v1468_v2 = vcombine.low %v1871_v18, %v1871_v18 }
 0x5a8   :  { %736 = vrot.lane.b32.xlu1 %v1903_v47, %s1803_s8 }
 0x5ac   :  { %734 = vrot.lane.b32.xlu1 %v1903_v47, %s1804_s9 }
 0x610   :  { %v465_v3 = vpop.xlane.xlu0 %464 }
 0x611   :  { %v469_v4 = vsub.f32 %v408_v48, %v465_v3 }
 0x613   :  { %v471_v5 = vmul.f32 1.442695, %v469_v4 }
 0x615   :  { %1743 = vpow2.f32 %v471_v5 }
 0x618   :  { %v468_v6 = vpop.xlane.xlu1 %467 }
 0x619   :  { %v470_v7 = vsub.f32 %v458_v58, %v468_v6 }
 0x61b   :  { %v473_v8 = vmul.f32 1.442695, %v470_v7 }
 0x61c   :  { %v536_v9 = vpop.permute.xlu1 %535 }
 0x61d   :  { %1745 = vpow2.f32 %v473_v8  ;;  %v541_v10 = vsel %vm270_vm3, %v536_v9, 0 }
 0x61e   :  { %1593 = vmatpush3.bf16.msra.mxu0 %v541_v10 }
 0x61f   :  { %v1744_v11 = vpop.eup %1743  ;;  %1604 = vmatprep.subr.bf16.mxu0 %v1795_v17 }
 0x620   :  { %v475_v12 = vsel %vm145_vm2, %v1744_v11, 0.0  ;;  %v586_v26 = vpop.permute.xlu1 %585 }
 0x621   :  { %476 = vadd.xlane.f32.xlu0 %v475_v12  ;;  %v591_v29 = vsel %vm270_vm3, %v586_v26, 0 }
 0x624   :  { %v636_v33 = vpop.permute.xlu1 %635 }
 0x625   :  { %v641_v34 = vsel %vm270_vm3, %v636_v33, 0 }
 0x627   :  { %v1746_v13 = vpop.eup %1745 }
 0x628   :  { %v478_v16 = vsel %vm145_vm2, %v1746_v13, 0.0  ;;  %v737_v36 = vpop.permute.xlu1 %736 }
 0x629   :  { %479 = vadd.xlane.f32.xlu0 %v478_v16  ;;  %v742_v37 = vsel %vm145_vm2, %v737_v36, 0 }
 0x62c   :  { %v735_v38 = vpop.permute.xlu1 %734 }
 0x63f   :  { %487 = vrot.lane.b32.xlu0 %v1901_v44, %s1801_s6 }
 0x643   :  { %686 = vrot.lane.b32.xlu0 %v1901_v44, %s1803_s8 }
 0x647   :  { %684 = vrot.lane.b32.xlu0 %v1901_v44, %s1804_s9 }
 0x6ae   :  { %v477_v20 = vpop.xlane.xlu0 %476 }
 0x6af   :  { %1747 = vrcp.f32 %v477_v20 }
 0x6b6   :  { %v480_v21 = vpop.xlane.xlu0 %479 }
 0x6b7   :  { %1749 = vrcp.f32 %v480_v21 }
 0x6b9   :  { %v1748_v22 = vpop.eup %1747 }
 0x6ba   :  { %v483_v23 = vmul.f32 %v1748_v22, %v1744_v11  ;;  %v488_v24 = vpop.permute.xlu0 %487 }
 0x6bb   :  { %v493_v25 = vsel %vm270_vm3, %v488_v24, 0 }
 0x6bc   :  { %1587 = vmatpush3.bf16.msra.mxu1 %v493_v25  ;;  %v485_v27 = vpack.c.bf16 %v483_v23, %v483_v23 }
 0x6bd   :  { %1598 = vmatprep.subr.bf16.mxu1 %v1795_v17 }
 0x6be   :  { %v687_v43 = vpop.permute.xlu0 %686 }
 0x6bf   :  { %1589 = vmatmul.mubr.msk.bf16.vlgmr.msra.gmra.mrb[20].mxu1 %vm145_vm2, %v485_v27  ;;  %v692_v50 = vsel %vm145_vm2, %v687_v43, 0 }
 0x6c0   :  { %1599 = vmatpush3.bf16.msra.mxu1 %v591_v29  ;;  %1600 = vmatprep.mubr.msk.bf16.mxu1 %vm1796_vm1, %v1795_v17 }
 0x6c1   :  { %v1750_v31 = vpop.eup %1749  ;;  %1610 = vmatprep.subr.bf16.mxu1 %v1795_v17 }
 0x6c2   :  { %v484_v32 = vmul.f32 %v1750_v31, %v1746_v13  ;;  %v685_v55 = vpop.permute.xlu0 %684 }
 0x6c4   :  { %v486_v35 = vpack.c.bf16 %v484_v32, %v484_v32 }
 0x6c6   :  { %1595 = vmatmul.mubr.msk.bf16.vlgmr.msra.gmra.mrb[8].mxu0 %vm145_vm2, %v486_v35 }
 0x6c7   :  { %1605 = vmatpush3.bf16.msra.mxu0 %v641_v34  ;;  %1606 = vmatprep.mubr.msk.bf16.mxu0 %vm1796_vm1, %v1795_v17 }
 0x6c8   :  { %1616 = vmatprep.subr.bf16.mxu0 %v1795_v17 }
 0x6ce   :  { %1607 = vmatmul.mubr.msk.bf16.vlgmr.msra.gmra.mrb[12].mxu0 %vm145_vm2, %v362_v46 }
 0x6cf   :  { %1618 = vmatprep.mubr.msk.bf16.mxu0 %vm1796_vm1, %v1795_v17 }
 0x6d0   :  { %1617 = vmatpush3.bf16.xpose.msra.mxu0 %v742_v37 }
 0x6d1   :  { %1628 = vmatprep.subr.bf16.mxu0 %v1795_v17 }
 0x6d7   :  { %1619 = vmatmul.mubr.msk.bf16.vlgmr.msra.gmra.mrb[16].mxu0 %vm145_vm2, %v735_v38 }
 0x6d8   :  { %1630 = vmatprep.mubr.msk.bf16.mxu0 %vm1796_vm1, %v1795_v17 }
 0x792   :  { %v529_v40 = vpop.f32.mrb[20].mxu1 }
 0x793   :  { %v1590_v41 = vpop.f32.mrb[21].mxu1 }
 0x794   :  { %v532_v42 = vpop.f32.mrb[22].mxu1 }
 0x795   :  { %v1591_v39 = vpop.f32.mrb[23].mxu1 }
 0x799   :  { %v577_v45 = vpop.f32.mrb[8].mxu0 }
 0x79a   :  { %v583_v46 = vpack.c.bf16 %v577_v45, %v529_v40  ;;  %v1596_v48 = vpop.f32.mrb[9].mxu0 }
 0x79b   :  { %v580_v49 = vpop.f32.mrb[10].mxu0 }
 0x79c   :  { %v1597_v51 = vpop.f32.mrb[11].mxu0  ;;  %1601 = vmatmul.mubr.msk.bf16.vlgmr.msra.gmra.mrb[24].mxu1 %vm145_vm2, %v583_v46 }
 0x79d   :  { %1611 = vmatpush3.bf16.xpose.msra.mxu1 %v692_v50  ;;  %1612 = vmatprep.mubr.msk.bf16.mxu1 %vm1796_vm1, %v1795_v17 }
 0x79e   :  { %1622 = vmatprep.subr.bf16.mxu1 %v1795_v17 }
 0x7a1   :  { %v677_v52 = vpop.f32.mrb[12].mxu0 }
 0x7a2   :  { %v1608_v54 = vpop.f32.mrb[13].mxu0 }
 0x7a3   :  { %v680_v56 = vpop.f32.mrb[14].mxu0 }
 0x7a4   :  { %v1609_v57 = vpop.f32.mrb[15].mxu0  ;;  %1613 = vmatmul.mubr.msk.bf16.vlgmr.msra.gmra.mrb[28].mxu1 %vm145_vm2, %v685_v55 }
 0x7a5   :  { %1624 = vmatprep.mubr.msk.bf16.mxu1 %vm1796_vm1, %v1795_v17 }
 0x7aa   :  { %v778_v58 = vpop.f32.mrb[16].mxu0 }
 0x7ab   :  { %v779_v59 = vadd.f32 %v778_v58, %v1922_v53  ;;  %v1620_v60 = vpop.f32.mrb[17].mxu0 }
 0x7ac   :  { %v781_v61 = vpop.f32.mrb[18].mxu0 }
 0x7ad   :  { %v1621_v62 = vpop.f32.mrb[19].mxu0  ;;  %v787_v63 = vsel %vm145_vm2, %v779_v59, -inf }
 0x7ae   :  { %788 = vmax.xlane.f32.xlu1 %v787_v63 }
 0x7bf   :  { %856 = vrot.lane.b32.xlu1 %v1903_v47, %s1805_s10 }
 0x7c3   :  { %906 = vrot.lane.b32.xlu1 %v1468_v2, %s1802_s7 }
 0x7c7   :  { %959 = vrot.lane.b32.xlu1 %v1901_v44, %s1806_s11 }
 0x7cb   :  { %957 = vrot.lane.b32.xlu1 %v1901_v44, %s1807_s12 }
 0x83b   :  { %v789_v3 = vpop.xlane.xlu1 %788 }
 0x83c   :  { %v791_v6 = vsub.f32 %v779_v59, %v789_v3 }
 0x83e   :  { %v794_v7 = vmul.f32 1.442695, %v791_v6 }
 0x83f   :  { %v857_v4 = vpop.permute.xlu1 %856 }
 0x840   :  { %v862_v5 = vsel %vm270_vm3, %v857_v4, 0  ;;  %1751 = vpow2.f32 %v794_v7 }
 0x841   :  { %1629 = vmatpush3.bf16.msra.mxu0 %v862_v5 }
 0x842   :  { %1640 = vmatprep.subr.bf16.mxu0 %v1795_v17 }
 0x843   :  { %v907_v33 = vpop.permute.xlu1 %906 }
 0x844   :  { %v912_v49 = vsel %vm270_vm3, %v907_v33, 0 }
 0x847   :  { %v960_v38 = vpop.permute.xlu1 %959 }
 0x848   :  { %v965_v41 = vsel %vm145_vm2, %v960_v38, 0 }
 0x84a   :  { %v1752_v25 = vpop.eup %1751 }
 0x84b   :  { %v799_v26 = vsel %vm145_vm2, %v1752_v25, 0.0  ;;  %v958_v42 = vpop.permute.xlu1 %957 }
 0x86f   :  { %v627_v8 = vpop.f32.mrb[24].mxu1 }
 0x870   :  { %v2026_v9 = vadd.f32 %v677_v52, %v627_v8  ;;  %v1602_v10 = vpop.f32.mrb[25].mxu1 }
 0x871   :  { %v630_v11 = vpop.f32.mrb[26].mxu1 }
 0x872   :  { %v2028_v12 = vadd.f32 %v680_v56, %v630_v11  ;;  %v1603_v13 = vpop.f32.mrb[27].mxu1 }
 0x877   :  { %v728_v16 = vpop.f32.mrb[28].mxu1 }
 0x878   :  { %v729_v20 = vadd.f32 %v728_v16, %v1922_v53  ;;  %v1614_v21 = vpop.f32.mrb[29].mxu1 }
 0x879   :  { %v731_v22 = vpop.f32.mrb[30].mxu1 }
 0x87a   :  { %v1615_v23 = vpop.f32.mrb[31].mxu1  ;;  %v784_v24 = vsel %vm145_vm2, %v729_v20, -inf }
 0x87b   :  { %785 = vmax.xlane.f32.xlu0 %v784_v24 }
 0x87f   :  { %800 = vadd.xlane.f32.xlu0 %v799_v26 }
 0x908   :  { %v786_v27 = vpop.xlane.xlu0 %785 }
 0x909   :  { %v790_v29 = vsub.f32 %v729_v20, %v786_v27 }
 0x90b   :  { %v792_v31 = vmul.f32 1.442695, %v790_v29 }
 0x90c   :  { %v801_v32 = vpop.xlane.xlu0 %800 }
 0x90d   :  { %1753 = vpow2.f32 %v792_v31 }
 0x90e   :  { %1755 = vrcp.f32 %v801_v32 }
 0x917   :  { %v1754_v34 = vpop.eup %1753 }
 0x918   :  { %v1756_v35 = vpop.eup %1755  ;;  %v796_v36 = vsel %vm145_vm2, %v1754_v34, 0.0 }
 0x919   :  { %v805_v37 = vmul.f32 %v1756_v35, %v1752_v25  ;;  %797 = vadd.xlane.f32.xlu0 %v796_v36 }
 0x91b   :  { %v807_v40 = vpack.c.bf16 %v805_v37, %v805_v37 }
 0x91d   :  { %1631 = vmatmul.mubr.msk.bf16.vlgmr.msra.gmra.mrb[20].mxu0 %vm145_vm2, %v807_v40 }
 0x91e   :  { %1641 = vmatpush3.bf16.xpose.msra.mxu0 %v965_v41  ;;  %1642 = vmatprep.mubr.msk.bf16.mxu0 %vm1796_vm1, %v1795_v17 }
 0x91f   :  { %1652 = vmatprep.subr.bf16.mxu0 %v1795_v17 }
 0x925   :  { %1643 = vmatmul.mubr.msk.bf16.vlgmr.msra.gmra.mrb[24].mxu0 %vm145_vm2, %v958_v42  ;;  %v1474_v42 = vcombine.low %v1876_v19, %v1876_v19 }
 0x926   :  { %1654 = vmatprep.mubr.msk.bf16.mxu0 %vm1796_vm1, %v1795_v17 }
 0x92f   :  { %808 = vrot.lane.b32.xlu0 %v1901_v44, %s1805_s10 }
 0x933   :  { %1009 = vrot.lane.b32.xlu0 %v1903_v47, %s1806_s11 }
 0x937   :  { %1007 = vrot.lane.b32.xlu0 %v1903_v47, %s1807_s12 }
 0x9a6   :  { %v798_v39 = vpop.xlane.xlu0 %797 }
 0x9a7   :  { %1757 = vrcp.f32 %v798_v39 }
 0x9aa   :  { %v809_v43 = vpop.permute.xlu0 %808 }
 0x9ab   :  { %v814_v45 = vsel %vm270_vm3, %v809_v43, 0 }
 0x9ac   :  { %1623 = vmatpush3.bf16.msra.mxu1 %v814_v45 }
 0x9ad   :  { %1634 = vmatprep.subr.bf16.mxu1 %v1795_v17 }
 0x9ae   :  { %v1010_v62 = vpop.permute.xlu0 %1009 }
 0x9af   :  { %v1015_v6 = vsel %vm145_vm2, %v1010_v62, 0 }
 0x9b1   :  { %v1758_v46 = vpop.eup %1757 }
 0x9b2   :  { %v804_v48 = vmul.f32 %v1758_v46, %v1754_v34 }
 0x9b4   :  { %v806_v50 = vpack.c.bf16 %v804_v48, %v804_v48 }
 0x9b6   :  { %1625 = vmatmul.mubr.msk.bf16.vlgmr.msra.gmra.mrb[32].mxu1 %vm145_vm2, %v806_v50 }
 0x9b7   :  { %1635 = vmatpush3.bf16.msra.mxu1 %v912_v49  ;;  %1636 = vmatprep.mubr.msk.bf16.mxu1 %vm1796_vm1, %v1795_v17  ;;  %v1476_v49 = vcombine.high %v1858_v14, %v1863_v15 }
 0x9b8   :  { %1646 = vmatprep.subr.bf16.mxu1 %v1795_v17 }
 0x9f0   :  { %v898_v51 = vpop.f32.mrb[20].mxu0 }
 0x9f1   :  { %v1632_v52 = vpop.f32.mrb[21].mxu0 }
 0x9f2   :  { %v901_v54 = vpop.f32.mrb[22].mxu0 }
 0x9f3   :  { %v1633_v55 = vpop.f32.mrb[23].mxu0 }
 0x9f8   :  { %v1001_v56 = vpop.f32.mrb[24].mxu0 }
 0x9f9   :  { %v1002_v57 = vadd.f32 %v1001_v56, %v1922_v53  ;;  %v1644_v58 = vpop.f32.mrb[25].mxu0 }
 0x9fa   :  { %v1004_v59 = vpop.f32.mrb[26].mxu0 }
 0x9fb   :  { %v1645_v60 = vpop.f32.mrb[27].mxu0  ;;  %v1057_v61 = vsel %vm145_vm2, %v1002_v57, -inf }
 0x9fc   :  { %1058 = vmax.xlane.f32.xlu1 %v1057_v61  ;;  %v1234_v60 = vsub.s32 4, %v1887_v28 }
 0xa0d   :  { %1081 = vrot.lane.b32.xlu1 %v1901_v44, %s1808_s13  ;;  %v1008_v44 = vpop.permute.xlu0 %1007 }
 0xa11   :  { %1179 = vrot.lane.b32.xlu1 %v1474_v42, %s1802_s7 }
 0xa89   :  { %v1059_v63 = vpop.xlane.xlu1 %1058  ;;  %v850_v2 = vpop.f32.mrb[32].mxu1 }
 0xa8a   :  { %v904_v3 = vpack.c.bf16 %v898_v51, %v850_v2  ;;  %v1626_v4 = vpop.f32.mrb[33].mxu1  ;;  %v1063_v11 = vsub.f32 %v1002_v57, %v1059_v63  ;;  %v1235_v63 = vrot.slane %v1893_v30, %v1234_v60 }
 0xa8b   :  { %v853_v5 = vpop.f32.mrb[34].mxu1 }
 0xa8c   :  { %v1627_v7 = vpop.f32.mrb[35].mxu1  ;;  %1637 = vmatmul.mubr.msk.bf16.vlgmr.msra.gmra.mrb[36].mxu1 %vm145_vm2, %v904_v3  ;;  %v1065_v13 = vmul.f32 1.442695, %v1063_v11 }
 0xa8d   :  { %v1082_v8 = vpop.permute.xlu1 %1081  ;;  %1647 = vmatpush3.bf16.xpose.msra.mxu1 %v1015_v6  ;;  %1648 = vmatprep.mubr.msk.bf16.mxu1 %vm1796_vm1, %v1795_v17 }
 0xa8e   :  { %v1087_v10 = vsel %vm270_vm3, %v1082_v8, 0  ;;  %1658 = vmatprep.subr.bf16.mxu1 %v1795_v17  ;;  %1759 = vpow2.f32 %v1065_v13 }
 0xa8f   :  { %1653 = vmatpush3.bf16.msra.mxu0 %v1087_v10 }
 0xa90   :  { %1664 = vmatprep.subr.bf16.mxu0 %v1795_v17 }
 0xa94   :  { %1649 = vmatmul.mubr.msk.bf16.vlgmr.msra.gmra.mrb[40].mxu1 %vm145_vm2, %v1008_v44 }
 0xa95   :  { %1660 = vmatprep.mubr.msk.bf16.mxu1 %vm1796_vm1, %v1795_v17 }
 0xa98   :  { %v1760_v33 = vpop.eup %1759 }
 0xb5f   :  { %v948_v16 = vpop.f32.mrb[36].mxu1 }
 0xb60   :  { %v2070_v20 = vadd.f32 %v948_v16, %v2026_v9  ;;  %v1638_v21 = vpop.f32.mrb[37].mxu1  ;;  %v1069_v9 = vsel %vm145_vm2, %v1760_v33, 0.0 }
 0xb61   :  { %v951_v22 = vpop.f32.mrb[38].mxu1 }
 0xb62   :  { %v2073_v23 = vadd.f32 %v951_v22, %v2028_v12  ;;  %v1639_v24 = vpop.f32.mrb[39].mxu1 }
 0xb67   :  { %v1051_v25 = vpop.f32.mrb[40].mxu1 }
 0xb68   :  { %v1052_v26 = vadd.f32 %v1051_v25, %v1922_v53  ;;  %v1650_v27 = vpop.f32.mrb[41].mxu1 }
 0xb69   :  { %v1054_v29 = vpop.f32.mrb[42].mxu1  ;;  %v1723_v27 = vld [vmem:[%s2178_s2] sm:$0xff]  }
 0xb6a   :  { %v1651_v31 = vpop.f32.mrb[43].mxu1  ;;  %v1060_v32 = vsel %vm145_vm2, %v1052_v26, -inf  ;;  %v1724_v29 = vld [vmem:[%s2178_s2 + $0x8] sm:$0xff]  }
 0xb6b   :  { %1061 = vmax.xlane.f32.xlu0 %v1060_v32  ;;  %v1725_v31 = vld [vmem:[%s2178_s2 + $0x10] sm:$0xff]   ;;  %v1728_v32 = vld [vmem:[%s2178_s2 + $0x28] sm:$0xff]  }
 0xb6f   :  { %1070 = vadd.xlane.f32.xlu0 %v1069_v9 }
 0xbf8   :  { %v1062_v34 = vpop.xlane.xlu0 %1061 }
 0xbf9   :  { %v1064_v35 = vsub.f32 %v1052_v26, %v1062_v34  ;;  %v1477_v26 = vcombine.high %v1871_v18, %v1876_v19  ;;  %v1726_v18 = vld [vmem:[%s2178_s2 + $0x18] sm:$0xff]   ;;  %v1727_v19 = vld [vmem:[%s2178_s2 + $0x20] sm:$0xff]  }
 0xbfb   :  { %v1067_v36 = vmul.f32 1.442695, %v1064_v35 }
 0xbfc   :  { %v1071_v37 = vpop.xlane.xlu0 %1070 }
 0xbfd   :  { %1761 = vpow2.f32 %v1067_v36 }
 0xbfe   :  { %1763 = vrcp.f32 %v1071_v37 }
 0xc07   :  { %v1762_v12 = vpop.eup %1761 }
 0xc08   :  { %v1764_v38 = vpop.eup %1763  ;;  %v1072_v53 = vsel %vm145_vm2, %v1762_v12, 0.0 }
 0xc09   :  { %v1077_v40 = vmul.f32 %v1764_v38, %v1760_v33  ;;  %1073 = vadd.xlane.f32.xlu0 %v1072_v53  ;;  %v1272_v53 = vsub.s32 3, %v1887_v28 }
 0xc0b   :  { %v1079_v41 = vpack.c.bf16 %v1077_v40, %v1077_v40 }
 0xc0d   :  { %1655 = vmatmul.mubr.msk.bf16.vlgmr.msra.gmra.mrb[28].mxu0 %vm145_vm2, %v1079_v41 }
 0xc0e   :  { %1666 = vmatprep.mubr.msk.bf16.mxu0 %vm1796_vm1, %v1795_v17 }
 0xc1f   :  { %1129 = vrot.lane.b32.xlu0 %v1903_v47, %s1808_s13  ;;  %v1180_v47 = vpop.permute.xlu1 %1179 }
 0xc20   :  { %v1185_v51 = vsel %vm270_vm3, %v1180_v47, 0  ;;  %v1729_v47 = vld [vmem:[%s2178_s2 + $0x30] sm:$0xff]  }
 0xc21   :  { %1665 = vmatpush3.bf16.msra.mxu0 %v1185_v51  ;;  %v1730_v51 = vld [vmem:[%s2178_s2 + $0x38] sm:$0xff]   ;;  %s1809_s2 = smov [#allocation2]  }
 0xc22   :  { %1678 = vmatprep.subr.bf16.mxu0 %v1795_v17  ;;  %s1438_s28 = sshll.u32 %s1809_s2, 4  ;;  %s1439_s28 = int_to_ptr.vmem [resolvable:$true] %s1438_s28 }
 0xc23   :  { %s1771_s29 = scalar_lea.vmem %s1439_s28, 256  ;;  %p1776_p1 = scmp.lt.s32.totalorder %s1439_s28, %s1439_s28 }
 0xc24   :  { %p1772_p0 = scmp.ne.s32.totalorder %s1439_s28, %s1771_s29  ;;  %p1777_p2 = scmp.lt.s32.totalorder %s1771_s29, %s1771_s29 }
 0xc26   :  { %p1778_p3 = por %p1777_p2, %p1776_p1 }
 0xc28   :  { %p1779_p4 = pnand %p1778_p3, %p1772_p0 }
 0xc96   :  { %v1074_v39 = vpop.xlane.xlu0 %1073 }
 0xc97   :  { %1765 = vrcp.f32 %v1074_v39 }
 0xc9a   :  { %v1130_v43 = vpop.permute.xlu0 %1129 }
 0xc9b   :  { %v1135_v45 = vsel %vm270_vm3, %v1130_v43, 0 }
 0xc9c   :  { %1659 = vmatpush3.bf16.msra.mxu1 %v1135_v45  ;;  %v1273_v45 = vrot.slane %v1893_v30, %v1272_v53 }
 0xc9d   :  { %1670 = vmatprep.subr.bf16.mxu1 %v1795_v17 }
 0xca1   :  { %v1766_v46 = vpop.eup %1765 }
 0xca2   :  { %v1078_v48 = vmul.f32 %v1766_v46, %v1762_v12  ;;  %v1266_v12 = vsub.s32 2, %v1887_v28 }
 0xca4   :  { %v1080_v50 = vpack.c.bf16 %v1078_v48, %v1078_v48  ;;  %v1267_v38 = vrot.slane %v1893_v30, %v1266_v12 }
 0xca6   :  { %1661 = vmatmul.mubr.msk.bf16.vlgmr.msra.gmra.mrb[44].mxu1 %vm145_vm2, %v1080_v50 }
 0xca7   :  { %1671 = vmatpush3.bf16.msra.mxu1 %v1476_v49  ;;  %1674 = vmatprep.mubr.msk.bf16.mxu1 %vm1796_vm1, %v1795_v17 }
 0xca8   :  { %1672 = vmatprep.subr.bf16.mxu1 %v1795_v17 }
 0xcab   :  { %1673 = vmatpush3.bf16.msra.mxu1 %v1477_v26 }
 0xce0   :  { %v1123_v52 = vpop.f32.mrb[28].mxu0 }
 0xce1   :  { %v1656_v54 = vpop.f32.mrb[29].mxu0 }
 0xce2   :  { %v1126_v55 = vpop.f32.mrb[30].mxu0 }
 0xce3   :  { %v1657_v56 = vpop.f32.mrb[31].mxu0 }
 0xd79   :  { %v1171_v14 = vpop.f32.mrb[44].mxu1 }
 0xd7a   :  { %v1177_v15 = vpack.c.bf16 %v1171_v14, %v1123_v52  ;;  %v1662_v57 = vpop.f32.mrb[45].mxu1  ;;  %v1279_v52 = vsub.s32 5, %v1887_v28 }
 0xd7b   :  { %v1174_v58 = vpop.f32.mrb[46].mxu1 }
 0xd7c   :  { %v1663_v59 = vpop.f32.mrb[47].mxu1  ;;  %1667 = vmatmul.mubr.msk.bf16.vlgmr.msra.gmra.mrb[32].mxu0 %vm145_vm2, %v1177_v15  ;;  %v1280_v54 = vrot.slane %v1893_v30, %v1279_v52 }
 0xd7d   :  { %1694 = vmatprep.mubr.msk.bf16.mxu0 %vm1796_vm1, %v1795_v17  ;;  %1679 = vmatpush3.bf16.msra.mxu0 %v1723_v27 }
 0xd7e   :  { %1680 = vmatprep.subr.bf16.mxu0 %v1795_v17 }
 0xd81   :  { %1681 = vmatpush3.bf16.msra.mxu0 %v1724_v29 }
 0xd82   :  { %1682 = vmatprep.subr.bf16.mxu0 %v1795_v17 }
 0xd85   :  { %1683 = vmatpush3.bf16.msra.mxu0 %v1725_v31 }
 0xd86   :  { %1684 = vmatprep.subr.bf16.mxu0 %v1795_v17 }
 0xd89   :  { %1685 = vmatpush3.bf16.msra.mxu0 %v1726_v18 }
 0xd8a   :  { %1686 = vmatprep.subr.bf16.mxu0 %v1795_v17 }
 0xd8d   :  { %1687 = vmatpush3.bf16.msra.mxu0 %v1727_v19 }
 0xd8e   :  { %1688 = vmatprep.subr.bf16.mxu0 %v1795_v17 }
 0xd91   :  { %1689 = vmatpush3.bf16.msra.mxu0 %v1728_v32 }
 0xd92   :  { %1690 = vmatprep.subr.bf16.mxu0 %v1795_v17 }
 0xd95   :  { %1691 = vmatpush3.bf16.msra.mxu0 %v1729_v47 }
 0xd96   :  { %1692 = vmatprep.subr.bf16.mxu0 %v1795_v17  ;;  %v1338_v17 = vsub.s32 6, %v1887_v28 }
 0xd99   :  { %1693 = vmatpush3.bf16.msra.mxu0 %v1730_v51 }
 0xe4f   :  { %v1221_v61 = vpop.f32.mrb[32].mxu0 }
 0xe50   :  { %v1228_v62 = vadd.f32 %v1221_v61, %v2070_v20  ;;  %v1668_v2 = vpop.f32.mrb[33].mxu0 }
 0xe51   :  { %v1224_v3 = vpop.f32.mrb[34].mxu0 }
 0xe52   :  { %v1230_v4 = vadd.f32 %v1228_v62, %v1840_v0  ;;  %v1229_v5 = vadd.f32 %v1224_v3, %v2073_v23  ;;  %v1669_v6 = vpop.f32.mrb[35].mxu0  ;;  %v1339_v62 = vrot.slane %v1893_v30, %v1338_v17 }
 0xe54   :  { %v2105_v7 = vadd.f32 %v1235_v63, %v1230_v4  ;;  %v1231_v8 = vadd.f32 %v1229_v5, %v1845_v1 }
 0xe56   :  { %v2108_v10 = vadd.f32 %v1235_v63, %v1231_v8  ;;  %v1238_v44 = vsel %vm43_vm0, %v2105_v7, 0.0 }
 0xe57   :  { %1239 = vadd.xlane.f32.xlu1 %v1238_v44 }
 0xe58   :  { %v1241_v11 = vsel %vm43_vm0, %v2108_v10, 0.0 }
 0xe59   :  { %1242 = vadd.xlane.f32.xlu0 %v1241_v11 }
 0xee4   :  { %v1240_v13 = vpop.xlane.xlu1 %1239 }
 0xee5   :  { %v1244_v16 = vmul.f32 0.03125, %v1240_v13 }
 0xee6   :  { %v1243_v0 = vpop.xlane.xlu0 %1242 }
 0xee7   :  { %v1246_v20 = vsub.f32 %v2105_v7, %v1244_v16  ;;  %v1245_v21 = vmul.f32 0.03125, %v1243_v0 }
 0xee9   :  { %v1247_v22 = vsub.f32 %v2108_v10, %v1245_v21  ;;  %v1248_v23 = vmul.f32 %v1246_v20, %v1246_v20 }
 0xeeb   :  { %v1250_v1 = vsel %vm43_vm0, %v1248_v23, 0.0  ;;  %v1249_v24 = vmul.f32 %v1247_v22, %v1247_v22 }
 0xeec   :  { %1251 = vadd.xlane.f32.xlu0 %v1250_v1 }
 0xeed   :  { %v1253_v25 = vsel %vm43_vm0, %v1249_v24, 0.0 }
 0xeee   :  { %1254 = vadd.xlane.f32.xlu1 %v1253_v25 }
 0xf79   :  { %v1252_v33 = vpop.xlane.xlu0 %1251 }
 0xf7a   :  { %v1256_v9 = vmul.f32 0.03125, %v1252_v33 }
 0xf7b   :  { %v1255_v34 = vpop.xlane.xlu1 %1254 }
 0xf7c   :  { %v1258_v35 = vadd.f32 1e-05, %v1256_v9  ;;  %v1257_v36 = vmul.f32 0.03125, %v1255_v34 }
 0xf7e   :  { %1767 = vrsqrt.f32 %v1258_v35  ;;  %v1259_v37 = vadd.f32 1e-05, %v1257_v36 }
 0xf80   :  { %1769 = vrsqrt.f32 %v1259_v37 }
 0xf88   :  { %v1768_v40 = vpop.eup %1767 }
 0xf89   :  { %v1262_v41 = vmul.f32 %v1768_v40, %v1246_v20 }
 0xf8a   :  { %v1770_v42 = vpop.eup %1769 }
 0xf8b   :  { %v1268_v39 = vmul.f32 %v1267_v38, %v1262_v41  ;;  %v1263_v43 = vmul.f32 %v1770_v42, %v1247_v22 }
 0xf8d   :  { %v1269_v46 = vmul.f32 %v1267_v38, %v1263_v43  ;;  %v1274_v48 = vadd.f32 %v1273_v45, %v1268_v39 }
 0xf8f   :  { %v1275_v49 = vadd.f32 %v1273_v45, %v1269_v46 }
 0xf91   :  { %v1276_v50 = vpack.c.bf16 %v1275_v49, %v1274_v48 }
 0xf93   :  { %1675 = vmatmul.mubr.msk.bf16.vlgmr.msra.gmra.mrb[48].mxu1 %vm43_vm0, %v1276_v50 }
0x1066   :  { %v1326_v55 = vpop.f32.mrb[48].mxu1 }
0x1067   :  { %v1327_v56 = vadd.f32 %v1326_v55, %v1280_v54  ;;  %v1676_v14 = vpop.f32.mrb[49].mxu1 }
0x1068   :  { %v1329_v15 = vpop.f32.mrb[50].mxu1 }
0x1069   :  { %v1330_v57 = vadd.f32 %v1329_v15, %v1280_v54  ;;  %v1677_v58 = vpop.f32.mrb[51].mxu1  ;;  %v1333_v59 = vmax.f32 %v1327_v56, 0.0 }
0x106b   :  { %v1334_v60 = vmax.f32 %v1330_v57, 0.0 }
0x106d   :  { %v1335_v61 = vpack.c.bf16 %v1334_v60, %v1333_v59 }
0x106f   :  { %1695 = vmatmul.mubr.bf16.vlgmr.msra.gmra.mrb[36].mxu0 %v1335_v61 }
0x1142   :  { %v1422_v63 = vpop.f32.mrb[36].mxu0 }
0x1143   :  { %v1423_v2 = vadd.f32 %v1422_v63, %v1339_v62  ;;  %v1696_v3 = vpop.f32.mrb[37].mxu0 }
0x1144   :  { %v1425_v4 = vpop.f32.mrb[38].mxu0 }
0x1145   :  { %v1429_v5 = vadd.f32 %v1423_v2, %v2105_v7  ;;  %v1426_v6 = vadd.f32 %v1425_v4, %v1339_v62  ;;  %v1697_v8 = vpop.f32.mrb[39].mxu0 }
0x1147   :  { %1431 = vst.msk [vmem:[#allocation2] sm:$0xff] %vm43_vm0, %v1429_v5  ;;  %v1430_v44 = vadd.f32 %v1426_v6, %v2108_v10 }
0x1149   :  { %1432 = vst.msk [vmem:[#allocation2 + $0x8] sm:$0xff] %vm43_vm0, %v1430_v44 }
0x114a   :  { %1782 = shalt.err (!%p1779_p4)
}
0x114b   :  { %s1783_s5 = scalar_lea.hbm %s2180_s4, 256 }
0x114c   :  { %p1784_p5 = scmp.ne.s32.totalorder %s2180_s4, %s1783_s5  ;;  %p1787_p6 = scmp.lt.u32.totalorder %s1783_s5, %s2180_s4 }
0x114e   :  { %p1789_p7 = pnand %p1787_p6, %p1784_p5 }
0x1150   :  { %1792 = shalt.err (!%p1789_p7)
}
0x1151   :  { %s1810_s10 = smov 128   ;;  %s1811_s11 = smov 8  }
0x1152   :  { %1444 = dma.vmem_to_hbm [thread:$0]  %s1439_s28, 256, %s2180_s4, [#allocation3], %s1810_s10, %s1810_s10, %s1811_s11  }
0x1153   :  { %1793 = dma.done.wait [#allocation3], 256  }
0x1154   :  { %1794 = vsyncadd [#allocation3], 4294967040 }
0x1155   :  { %1448 = vsyncpa [#allocation3], 1 }

</bundles_post_ra>
